<compile_context>
chip_gen: v7x
topology: tpu7x:2x2x1
jax: 0.10.0
libtpu: 0.0.40
codegen_flags: <defaults>
</compile_context>

<pallas_src>
import math
from functools import partial

import jax
import jax.numpy as jnp
from jax.experimental import pallas as pl
from jax.experimental.pallas import tpu as pltpu


def _round_up(x, m):
    return ((x + m - 1) // m) * m


# ----------------------------- fused Pallas kernel ---------------------------
def _make_butterfly_kernel(noise_std, batch, out_dim, lane_pad, use_noise):
    """Whole butterfly DAG evaluated with every intermediate kept on-chip."""
    O = out_dim
    pad = lane_pad - 5 * O

    def mlp_bn(x_in, w1, b1, w2, bgb):
        # Linear -> ReLU -> Linear -> BatchNorm1d (training batch stats).
        h = jnp.maximum(
            jnp.dot(x_in, w1, preferred_element_type=jnp.float32) + b1, 0.0)
        z = jnp.dot(h, w2, preferred_element_type=jnp.float32) + bgb[0:1, :]
        mean = jnp.mean(z, axis=0, keepdims=True)
        var = jnp.mean(jnp.square(z - mean), axis=0, keepdims=True)
        zn = (z - mean) * jax.lax.rsqrt(var + 1e-5)
        return zn * bgb[1:2, :] + bgb[2:3, :]

    def kernel(*refs):
        if use_noise:
            noise_ref, refs = refs[0], refs[1:]
        (x1_ref, x2_ref,
         wA1, bA1, wA2, bgbA,          # nodes 0 & 1, block-diag fused
         wB1, bB1, wB2, bgbB,          # node 2
         wC1, bC1, wC2, bgbC,          # nodes 3 & 4, packed fused
         o_ref) = refs

        x = jnp.concatenate([x1_ref[...].astype(jnp.float32),
                             x2_ref[...].astype(jnp.float32)], axis=-1)

        # nodes 0 & 1 fused: z01 = [out0 | out1]  (B, 2*O)
        z01 = mlp_bn(x, wA1[...], bA1[...], wA2[...], bgbA[...])

        # node 2: its input is exactly [out0 | out1]
        z2 = mlp_bn(z01, wB1[...], bB1[...], wB2[...], bgbB[...])     # (B, O)
        if use_noise:
            z2 = z2 + noise_ref[:, 0:O] * noise_std

        # nodes 3 & 4 fused: input [out0 | out1 | out2]  (B, 3*O)
        zc = jnp.concatenate([z01, z2], axis=-1)
        z34 = mlp_bn(zc, wC1[...], bC1[...], wC2[...], bgbC[...])     # (B, 2*O)
        if use_noise:
            z34 = z34 + noise_ref[:, O:3 * O] * noise_std

        # Single lane-dense (B, 128) store: [out0|out1|out2|out3|out4|zeros].
        pieces = [z01, z2, z34]
        if pad > 0:
            pieces.append(jnp.zeros((batch, pad), jnp.float32))
        o_ref[...] = jnp.concatenate(pieces, axis=-1)

    return kernel


# --------------------------------- wrapper -----------------------------------
@partial(jax.jit, static_argnames=("noise_std",))
def graph_butterfly_slab(packed, x1, x2, seed, *, noise_std):
    """Returns one lane-padded (batch, >=128) slab; column i*O:(i+1)*O is node i."""
    (wA1, bA1, wA2, bgbA, wB1, bB1, wB2, bgbB, wC1, bC1, wC2, bgbC) = packed
    batch = x1.shape[0]
    out_dim = bgbB.shape[1]
    lane_pad = max(128, _round_up(5 * out_dim, 128))
    use_noise = noise_std != 0.0

    kernel = _make_butterfly_kernel(noise_std, batch, out_dim, lane_pad,
                                    use_noise)
    vmem = pl.BlockSpec(memory_space=pltpu.MemorySpace.VMEM)

    args = [x1, x2, wA1, bA1, wA2, bgbA, wB1, bB1, wB2, bgbB,
            wC1, bC1, wC2, bgbC]
    if use_noise:
        key = jax.random.PRNGKey(jnp.asarray(seed, dtype=jnp.int32))
        noise = jax.random.normal(key, (batch, 3 * out_dim), jnp.float32)
        args = [noise] + args

    return pl.pallas_call(
        kernel,
        out_shape=jax.ShapeDtypeStruct((batch, lane_pad), jnp.float32),
        in_specs=[vmem] * len(args),
        out_specs=vmem,
    )(*args)


def split_slab(slab, out_dim, num_nodes=5):
    outs = [slab[:, i * out_dim:(i + 1) * out_dim] for i in range(num_nodes)]
    return outs[-2], outs[-1], outs[:-2]


# --------------------------- parameter creation ------------------------------
def init_node_params(key, input_size, hidden_size, output_size):
    """Matches nn.Linear's U(-1/sqrt(fan_in), 1/sqrt(fan_in)) and BN (1, 0)."""
    k1, k2, k3, k4 = jax.random.split(key, 4)
    lim1 = 1.0 / math.sqrt(input_size)
    lim2 = 1.0 / math.sqrt(hidden_size)
    w1 = jax.random.uniform(k1, (input_size, hidden_size), jnp.float32, -lim1, lim1)
    b1 = jax.random.uniform(k2, (1, hidden_size), jnp.float32, -lim1, lim1)
    w2 = jax.random.uniform(k3, (hidden_size, output_size), jnp.float32, -lim2, lim2)
    b2 = jax.random.uniform(k4, (1, output_size), jnp.float32, -lim2, lim2)
    gamma = jnp.ones((1, output_size), jnp.float32)
    beta = jnp.zeros((1, output_size), jnp.float32)
    return (w1, b1, w2, b2, gamma, beta)


def pack_butterfly_params(params_list, out_dim):
    """Pre-pack per-node weights into fused block-diagonal stages (butterfly DAG)."""
    def blockdiag(a, b):
        z_tr = jnp.zeros((a.shape[0], b.shape[1]), a.dtype)
        z_bl = jnp.zeros((b.shape[0], a.shape[1]), a.dtype)
        return jnp.concatenate(
            [jnp.concatenate([a, z_tr], axis=1),
             jnp.concatenate([z_bl, b], axis=1)], axis=0)

    (w1_0, b1_0, w2_0, b2_0, g0, be0) = params_list[0]
    (w1_1, b1_1, w2_1, b2_1, g1, be1) = params_list[1]
    (w1_2, b1_2, w2_2, b2_2, g2, be2) = params_list[2]
    (w1_3, b1_3, w2_3, b2_3, g3, be3) = params_list[3]
    (w1_4, b1_4, w2_4, b2_4, g4, be4) = params_list[4]
    O = out_dim

    # Stage A: nodes 0 & 1 (independent sources), block-diagonal fusion.
    wA1 = blockdiag(w1_0, w1_1)                          # (2*in, 2*hid)
    bA1 = jnp.concatenate([b1_0, b1_1], axis=1)          # (1, 2*hid)
    wA2 = blockdiag(w2_0, w2_1)                          # (2*hid, 2*out)
    bgbA = jnp.concatenate(
        [jnp.concatenate([b2_0, b2_1], axis=1),
         jnp.concatenate([g0, g1], axis=1),
         jnp.concatenate([be0, be1], axis=1)], axis=0)   # (3, 2*out)

    # Stage B: node 2, input = [out0 | out1].
    bgbB = jnp.concatenate([b2_2, g2, be2], axis=0)      # (3, out)

    # Stage C: nodes 3 & 4, input = [out0 | out1 | out2].
    hid = w1_3.shape[1]
    zer = jnp.zeros((O, hid), jnp.float32)
    wC1 = jnp.concatenate(
        [jnp.concatenate([w1_3[:O], zer], axis=1),        # rows fed by out0
         jnp.concatenate([zer, w1_4[:O]], axis=1),        # rows fed by out1
         jnp.concatenate([w1_3[O:], w1_4[O:]], axis=1)],  # rows fed by out2
        axis=0)                                           # (3*out, 2*hid)
    bC1 = jnp.concatenate([b1_3, b1_4], axis=1)           # (1, 2*hid)
    wC2 = blockdiag(w2_3, w2_4)                           # (2*hid, 2*out)
    bgbC = jnp.concatenate(
        [jnp.concatenate([b2_3, b2_4], axis=1),
         jnp.concatenate([g3, g4], axis=1),
         jnp.concatenate([be3, be4], axis=1)], axis=0)    # (3, 2*out)

    return (wA1, bA1, wA2, bgbA,
            w1_2, b1_2, w2_2, bgbB,
            wC1, bC1, wC2, bgbC)


# ------------------------- pure-JAX reference (no noise) ---------------------
def _node_ref(x, p):
    w1, b1, w2, b2, g, b = p
    h = jnp.maximum(x @ w1 + b1, 0.0)
    z = h @ w2 + b2
    mean = jnp.mean(z, axis=0, keepdims=True)
    var = jnp.mean((z - mean) ** 2, axis=0, keepdims=True)
    return (z - mean) * jax.lax.rsqrt(var + 1e-5) * g + b


def _forward_ref_no_noise(params_list, x1, x2, adjacency, topo_order):
    outs = [None] * len(adjacency)
    outs[0] = _node_ref(x1, params_list[0])
    outs[1] = _node_ref(x2, params_list[1])
    for i in topo_order[2:]:
        parents = [j for j, v in enumerate(adjacency[i]) if v == 1]
        outs[i] = _node_ref(jnp.concatenate([outs[j] for j in parents], -1),
                            params_list[i])
    return outs[-2], outs[-1], outs[:-2]


# ----------------------------------- main ------------------------------------
if __name__ == "__main__":
    # Butterfly network: 0,1 sources; 2 combines {0,1}; 3 (y1) {0,2}; 4 (y2) {1,2}.
    # adjacency[i][j] == 1  <=>  j is a parent of i.  The kernel is specialized
    # to exactly this DAG (validated against the generic reference below).
    adjacency_matrix = (
        (0, 0, 0, 0, 0),
        (0, 0, 0, 0, 0),
        (1, 1, 0, 0, 0),
        (1, 0, 1, 0, 0),
        (0, 1, 1, 0, 0),
    )
    topological_order = (0, 1, 2, 3, 4)

    batch = 8
    output_size = 16
    input_size = 2 * output_size     # internal nodes concatenate two parents
    hidden_size = 32
    noise_std_dev = 0.1

    root = jax.random.PRNGKey(0)
    key_params, key_x1, key_x2 = jax.random.split(root, 3)

    node_keys = jax.random.split(key_params, len(adjacency_matrix))
    params_list = [
        init_node_params(node_keys[n], input_size, hidden_size, output_size)
        for n in range(len(adjacency_matrix))
    ]
    packed = pack_butterfly_params(params_list, output_size)

    x1 = jax.random.normal(key_x1, (batch, input_size), jnp.float32)
    x2 = jax.random.normal(key_x2, (batch, input_size), jnp.float32)
    seed = jnp.int32(1234)

    # Correctness check of the fused kernel (noise disabled -> deterministic).
    slab0 = graph_butterfly_slab(packed, x1, x2, seed, noise_std=0.0)
    y1c, y2c, intc = split_slab(slab0, output_size)
    r1, r2, rint = _forward_ref_no_noise(params_list, x1, x2,
                                         adjacency_matrix, topological_order)
    for a, b in zip([y1c, y2c] + list(intc), [r1, r2] + list(rint)):
        assert bool(jnp.allclose(a, b, atol=1e-3, rtol=1e-3)), \
            "fused kernel mismatch vs pure-JAX reference"

    # Actual forward with noise.
    slab = graph_butterfly_slab(packed, x1, x2, seed, noise_std=noise_std_dev)
    slab = jax.block_until_ready(slab)
    y1, y2, intermediates = split_slab(slab, output_size)

    assert y1.shape == (batch, output_size)
    assert y2.shape == (batch, output_size)
    assert len(intermediates) == len(adjacency_matrix) - 2
    assert bool(jnp.all(jnp.isfinite(y1))) and bool(jnp.all(jnp.isfinite(y2)))
    print("KERNEL_OK")
</pallas_src>

<mosaic_0001>
module attributes {stable_mosaic.version = 11 : i64} {
  func.func @kernel(%arg0: memref<8x32xf32, #tpu.memory_space<vmem>>, %arg1: memref<8x32xf32, #tpu.memory_space<vmem>>, %arg2: memref<64x64xf32, #tpu.memory_space<vmem>>, %arg3: memref<1x64xf32, #tpu.memory_space<vmem>>, %arg4: memref<64x32xf32, #tpu.memory_space<vmem>>, %arg5: memref<3x32xf32, #tpu.memory_space<vmem>>, %arg6: memref<32x32xf32, #tpu.memory_space<vmem>>, %arg7: memref<1x32xf32, #tpu.memory_space<vmem>>, %arg8: memref<32x16xf32, #tpu.memory_space<vmem>>, %arg9: memref<3x16xf32, #tpu.memory_space<vmem>>, %arg10: memref<48x64xf32, #tpu.memory_space<vmem>>, %arg11: memref<1x64xf32, #tpu.memory_space<vmem>>, %arg12: memref<64x32xf32, #tpu.memory_space<vmem>>, %arg13: memref<3x32xf32, #tpu.memory_space<vmem>>, %arg14: memref<8x128xf32, #tpu.memory_space<vmem>>) attributes {dimension_semantics = [], scalar_prefetch = 0 : i64, scratch_operands = 0 : i64, tpu.core_type = #tpu.core_type<tc>} {
    %c0 = arith.constant 0 : index
    %c0_0 = arith.constant 0 : index
    %0 = vector.load %arg0[%c0, %c0_0] : memref<8x32xf32, #tpu.memory_space<vmem>>, vector<8x32xf32>
    %c0_1 = arith.constant 0 : index
    %c0_2 = arith.constant 0 : index
    %1 = vector.load %arg1[%c0_1, %c0_2] : memref<8x32xf32, #tpu.memory_space<vmem>>, vector<8x32xf32>
    %2 = tpu.concatenate %0, %1 in 1 : vector<8x32xf32>, vector<8x32xf32> -> vector<8x64xf32>
    %c0_3 = arith.constant 0 : index
    %c0_4 = arith.constant 0 : index
    %3 = vector.load %arg2[%c0_3, %c0_4] : memref<64x64xf32, #tpu.memory_space<vmem>>, vector<64x64xf32>
    %c0_5 = arith.constant 0 : index
    %c0_6 = arith.constant 0 : index
    %4 = vector.load %arg3[%c0_5, %c0_6] : memref<1x64xf32, #tpu.memory_space<vmem>>, vector<1x64xf32>
    %c0_7 = arith.constant 0 : index
    %c0_8 = arith.constant 0 : index
    %5 = vector.load %arg4[%c0_7, %c0_8] : memref<64x32xf32, #tpu.memory_space<vmem>>, vector<64x32xf32>
    %c0_9 = arith.constant 0 : index
    %c0_10 = arith.constant 0 : index
    %6 = vector.load %arg5[%c0_9, %c0_10] : memref<3x32xf32, #tpu.memory_space<vmem>>, vector<3x32xf32>
    %cst = arith.constant dense<0.000000e+00> : vector<8x64xf32>
    %7 = tpu.matmul %2, %3, %cst {dimension_numbers = #tpu.dot_dimension_numbers<[1], [0], [0], [1], [0, 0, 1, 1], [], []>} : vector<8x64xf32>, vector<64x64xf32>, vector<8x64xf32> -> vector<8x64xf32>
    %8 = vector.broadcast %4 : vector<1x64xf32> to vector<8x64xf32>
    %9 = arith.addf %7, %8 : vector<8x64xf32>
    %cst_11 = arith.constant 0.000000e+00 : f32
    %10 = vector.broadcast %cst_11 : f32 to vector<8x64xf32>
    %11 = arith.maximumf %9, %10 : vector<8x64xf32>
    %cst_12 = arith.constant dense<0.000000e+00> : vector<8x32xf32>
    %12 = tpu.matmul %11, %5, %cst_12 {dimension_numbers = #tpu.dot_dimension_numbers<[1], [0], [0], [1], [0, 0, 1, 1], [], []>} : vector<8x64xf32>, vector<64x32xf32>, vector<8x32xf32> -> vector<8x32xf32>
    %13 = vector.extract_strided_slice %6 {offsets = [0, 0], sizes = [1, 32], strides = [1, 1]} : vector<3x32xf32> to vector<1x32xf32>
    %14 = vector.broadcast %13 : vector<1x32xf32> to vector<8x32xf32>
    %15 = arith.addf %12, %14 : vector<8x32xf32>
    %cst_13 = arith.constant dense<0.000000e+00> : vector<32xf32>
    %16 = vector.multi_reduction <add>, %15, %cst_13 [0] : vector<8x32xf32> to vector<32xf32>
    %17 = vector.shape_cast %16 : vector<32xf32> to vector<1x32xf32>
    %cst_14 = arith.constant 8.000000e+00 : f32
    %18 = vector.broadcast %cst_14 : f32 to vector<1x32xf32>
    %19 = arith.divf %17, %18 : vector<1x32xf32>
    %20 = vector.broadcast %19 : vector<1x32xf32> to vector<8x32xf32>
    %21 = arith.subf %15, %20 : vector<8x32xf32>
    %22 = arith.mulf %21, %21 : vector<8x32xf32>
    %cst_15 = arith.constant dense<0.000000e+00> : vector<32xf32>
    %23 = vector.multi_reduction <add>, %22, %cst_15 [0] : vector<8x32xf32> to vector<32xf32>
    %24 = vector.shape_cast %23 : vector<32xf32> to vector<1x32xf32>
    %cst_16 = arith.constant 8.000000e+00 : f32
    %25 = vector.broadcast %cst_16 : f32 to vector<1x32xf32>
    %26 = arith.divf %24, %25 : vector<1x32xf32>
    %27 = vector.broadcast %19 : vector<1x32xf32> to vector<8x32xf32>
    %28 = arith.subf %15, %27 : vector<8x32xf32>
    %cst_17 = arith.constant 9.99999974E-6 : f32
    %29 = vector.broadcast %cst_17 : f32 to vector<1x32xf32>
    %30 = arith.addf %26, %29 : vector<1x32xf32>
    %31 = math.rsqrt %30 : vector<1x32xf32>
    %32 = vector.broadcast %31 : vector<1x32xf32> to vector<8x32xf32>
    %33 = arith.mulf %28, %32 : vector<8x32xf32>
    %34 = vector.extract_strided_slice %6 {offsets = [1, 0], sizes = [1, 32], strides = [1, 1]} : vector<3x32xf32> to vector<1x32xf32>
    %35 = vector.broadcast %34 : vector<1x32xf32> to vector<8x32xf32>
    %36 = arith.mulf %33, %35 : vector<8x32xf32>
    %37 = vector.extract_strided_slice %6 {offsets = [2, 0], sizes = [1, 32], strides = [1, 1]} : vector<3x32xf32> to vector<1x32xf32>
    %38 = vector.broadcast %37 : vector<1x32xf32> to vector<8x32xf32>
    %39 = arith.addf %36, %38 : vector<8x32xf32>
    %c0_18 = arith.constant 0 : index
    %c0_19 = arith.constant 0 : index
    %40 = vector.load %arg6[%c0_18, %c0_19] : memref<32x32xf32, #tpu.memory_space<vmem>>, vector<32x32xf32>
    %c0_20 = arith.constant 0 : index
    %c0_21 = arith.constant 0 : index
    %41 = vector.load %arg7[%c0_20, %c0_21] : memref<1x32xf32, #tpu.memory_space<vmem>>, vector<1x32xf32>
    %c0_22 = arith.constant 0 : index
    %c0_23 = arith.constant 0 : index
    %42 = vector.load %arg8[%c0_22, %c0_23] : memref<32x16xf32, #tpu.memory_space<vmem>>, vector<32x16xf32>
    %c0_24 = arith.constant 0 : index
    %c0_25 = arith.constant 0 : index
    %43 = vector.load %arg9[%c0_24, %c0_25] : memref<3x16xf32, #tpu.memory_space<vmem>>, vector<3x16xf32>
    %cst_26 = arith.constant dense<0.000000e+00> : vector<8x32xf32>
    %44 = tpu.matmul %39, %40, %cst_26 {dimension_numbers = #tpu.dot_dimension_numbers<[1], [0], [0], [1], [0, 0, 1, 1], [], []>} : vector<8x32xf32>, vector<32x32xf32>, vector<8x32xf32> -> vector<8x32xf32>
    %45 = vector.broadcast %41 : vector<1x32xf32> to vector<8x32xf32>
    %46 = arith.addf %44, %45 : vector<8x32xf32>
    %cst_27 = arith.constant 0.000000e+00 : f32
    %47 = vector.broadcast %cst_27 : f32 to vector<8x32xf32>
    %48 = arith.maximumf %46, %47 : vector<8x32xf32>
    %cst_28 = arith.constant dense<0.000000e+00> : vector<8x16xf32>
    %49 = tpu.matmul %48, %42, %cst_28 {dimension_numbers = #tpu.dot_dimension_numbers<[1], [0], [0], [1], [0, 0, 1, 1], [], []>} : vector<8x32xf32>, vector<32x16xf32>, vector<8x16xf32> -> vector<8x16xf32>
    %50 = vector.extract_strided_slice %43 {offsets = [0, 0], sizes = [1, 16], strides = [1, 1]} : vector<3x16xf32> to vector<1x16xf32>
    %51 = vector.broadcast %50 : vector<1x16xf32> to vector<8x16xf32>
    %52 = arith.addf %49, %51 : vector<8x16xf32>
    %cst_29 = arith.constant dense<0.000000e+00> : vector<16xf32>
    %53 = vector.multi_reduction <add>, %52, %cst_29 [0] : vector<8x16xf32> to vector<16xf32>
    %54 = vector.shape_cast %53 : vector<16xf32> to vector<1x16xf32>
    %cst_30 = arith.constant 8.000000e+00 : f32
    %55 = vector.broadcast %cst_30 : f32 to vector<1x16xf32>
    %56 = arith.divf %54, %55 : vector<1x16xf32>
    %57 = vector.broadcast %56 : vector<1x16xf32> to vector<8x16xf32>
    %58 = arith.subf %52, %57 : vector<8x16xf32>
    %59 = arith.mulf %58, %58 : vector<8x16xf32>
    %cst_31 = arith.constant dense<0.000000e+00> : vector<16xf32>
    %60 = vector.multi_reduction <add>, %59, %cst_31 [0] : vector<8x16xf32> to vector<16xf32>
    %61 = vector.shape_cast %60 : vector<16xf32> to vector<1x16xf32>
    %cst_32 = arith.constant 8.000000e+00 : f32
    %62 = vector.broadcast %cst_32 : f32 to vector<1x16xf32>
    %63 = arith.divf %61, %62 : vector<1x16xf32>
    %64 = vector.broadcast %56 : vector<1x16xf32> to vector<8x16xf32>
    %65 = arith.subf %52, %64 : vector<8x16xf32>
    %cst_33 = arith.constant 9.99999974E-6 : f32
    %66 = vector.broadcast %cst_33 : f32 to vector<1x16xf32>
    %67 = arith.addf %63, %66 : vector<1x16xf32>
    %68 = math.rsqrt %67 : vector<1x16xf32>
    %69 = vector.broadcast %68 : vector<1x16xf32> to vector<8x16xf32>
    %70 = arith.mulf %65, %69 : vector<8x16xf32>
    %71 = vector.extract_strided_slice %43 {offsets = [1, 0], sizes = [1, 16], strides = [1, 1]} : vector<3x16xf32> to vector<1x16xf32>
    %72 = vector.broadcast %71 : vector<1x16xf32> to vector<8x16xf32>
    %73 = arith.mulf %70, %72 : vector<8x16xf32>
    %74 = vector.extract_strided_slice %43 {offsets = [2, 0], sizes = [1, 16], strides = [1, 1]} : vector<3x16xf32> to vector<1x16xf32>
    %75 = vector.broadcast %74 : vector<1x16xf32> to vector<8x16xf32>
    %76 = arith.addf %73, %75 : vector<8x16xf32>
    %77 = tpu.concatenate %39, %76 in 1 : vector<8x32xf32>, vector<8x16xf32> -> vector<8x48xf32>
    %c0_34 = arith.constant 0 : index
    %c0_35 = arith.constant 0 : index
    %78 = vector.load %arg10[%c0_34, %c0_35] : memref<48x64xf32, #tpu.memory_space<vmem>>, vector<48x64xf32>
    %c0_36 = arith.constant 0 : index
    %c0_37 = arith.constant 0 : index
    %79 = vector.load %arg11[%c0_36, %c0_37] : memref<1x64xf32, #tpu.memory_space<vmem>>, vector<1x64xf32>
    %c0_38 = arith.constant 0 : index
    %c0_39 = arith.constant 0 : index
    %80 = vector.load %arg12[%c0_38, %c0_39] : memref<64x32xf32, #tpu.memory_space<vmem>>, vector<64x32xf32>
    %c0_40 = arith.constant 0 : index
    %c0_41 = arith.constant 0 : index
    %81 = vector.load %arg13[%c0_40, %c0_41] : memref<3x32xf32, #tpu.memory_space<vmem>>, vector<3x32xf32>
    %cst_42 = arith.constant dense<0.000000e+00> : vector<8x64xf32>
    %82 = tpu.matmul %77, %78, %cst_42 {dimension_numbers = #tpu.dot_dimension_numbers<[1], [0], [0], [1], [0, 0, 1, 1], [], []>} : vector<8x48xf32>, vector<48x64xf32>, vector<8x64xf32> -> vector<8x64xf32>
    %83 = vector.broadcast %79 : vector<1x64xf32> to vector<8x64xf32>
    %84 = arith.addf %82, %83 : vector<8x64xf32>
    %cst_43 = arith.constant 0.000000e+00 : f32
    %85 = vector.broadcast %cst_43 : f32 to vector<8x64xf32>
    %86 = arith.maximumf %84, %85 : vector<8x64xf32>
    %cst_44 = arith.constant dense<0.000000e+00> : vector<8x32xf32>
    %87 = tpu.matmul %86, %80, %cst_44 {dimension_numbers = #tpu.dot_dimension_numbers<[1], [0], [0], [1], [0, 0, 1, 1], [], []>} : vector<8x64xf32>, vector<64x32xf32>, vector<8x32xf32> -> vector<8x32xf32>
    %88 = vector.extract_strided_slice %81 {offsets = [0, 0], sizes = [1, 32], strides = [1, 1]} : vector<3x32xf32> to vector<1x32xf32>
    %89 = vector.broadcast %88 : vector<1x32xf32> to vector<8x32xf32>
    %90 = arith.addf %87, %89 : vector<8x32xf32>
    %cst_45 = arith.constant dense<0.000000e+00> : vector<32xf32>
    %91 = vector.multi_reduction <add>, %90, %cst_45 [0] : vector<8x32xf32> to vector<32xf32>
    %92 = vector.shape_cast %91 : vector<32xf32> to vector<1x32xf32>
    %cst_46 = arith.constant 8.000000e+00 : f32
    %93 = vector.broadcast %cst_46 : f32 to vector<1x32xf32>
    %94 = arith.divf %92, %93 : vector<1x32xf32>
    %95 = vector.broadcast %94 : vector<1x32xf32> to vector<8x32xf32>
    %96 = arith.subf %90, %95 : vector<8x32xf32>
    %97 = arith.mulf %96, %96 : vector<8x32xf32>
    %cst_47 = arith.constant dense<0.000000e+00> : vector<32xf32>
    %98 = vector.multi_reduction <add>, %97, %cst_47 [0] : vector<8x32xf32> to vector<32xf32>
    %99 = vector.shape_cast %98 : vector<32xf32> to vector<1x32xf32>
    %cst_48 = arith.constant 8.000000e+00 : f32
    %100 = vector.broadcast %cst_48 : f32 to vector<1x32xf32>
    %101 = arith.divf %99, %100 : vector<1x32xf32>
    %102 = vector.broadcast %94 : vector<1x32xf32> to vector<8x32xf32>
    %103 = arith.subf %90, %102 : vector<8x32xf32>
    %cst_49 = arith.constant 9.99999974E-6 : f32
    %104 = vector.broadcast %cst_49 : f32 to vector<1x32xf32>
    %105 = arith.addf %101, %104 : vector<1x32xf32>
    %106 = math.rsqrt %105 : vector<1x32xf32>
    %107 = vector.broadcast %106 : vector<1x32xf32> to vector<8x32xf32>
    %108 = arith.mulf %103, %107 : vector<8x32xf32>
    %109 = vector.extract_strided_slice %81 {offsets = [1, 0], sizes = [1, 32], strides = [1, 1]} : vector<3x32xf32> to vector<1x32xf32>
    %110 = vector.broadcast %109 : vector<1x32xf32> to vector<8x32xf32>
    %111 = arith.mulf %108, %110 : vector<8x32xf32>
    %112 = vector.extract_strided_slice %81 {offsets = [2, 0], sizes = [1, 32], strides = [1, 1]} : vector<3x32xf32> to vector<1x32xf32>
    %113 = vector.broadcast %112 : vector<1x32xf32> to vector<8x32xf32>
    %114 = arith.addf %111, %113 : vector<8x32xf32>
    %cst_50 = arith.constant 0.000000e+00 : f32
    %115 = vector.broadcast %cst_50 : f32 to vector<8x48xf32>
    %116 = tpu.concatenate %39, %76, %114, %115 in 1 : vector<8x32xf32>, vector<8x16xf32>, vector<8x32xf32>, vector<8x48xf32> -> vector<8x128xf32>
    %c0_51 = arith.constant 0 : index
    %c0_52 = arith.constant 0 : index
    %117 = vector.load %arg14[%c0_51, %c0_52] : memref<8x128xf32, #tpu.memory_space<vmem>>, vector<8x128xf32>
    tpu.vector_store %arg14[%c0_51, %c0_52], %116 {strides = array<i32>} : memref<8x128xf32, #tpu.memory_space<vmem>>, vector<8x128xf32>,
    return
  }
}

</mosaic_0001>

<bundles_post_ra>
// kernel: graph_butterfly_slab.1
= control target key start
LH: loop header
LB: loop body
LE: loop exit
PB: predicated region body
PF: predicated region fallthrough
CT: control target
= control target key end

     0   :  { %s935_s19 = smov 32   ;;  %v936_v3 = vmov 0.0|0.0   ;;  %vm937_vm0 = vmmov 0   ;;  %v938_v7 = vmov 0.0   ;;  %s1231_s0 = inlined_call_operand.vmem [shape: f32[8,32], index: 0, kind: input, shape index: {}]   ;;  %s1232_s1 = inlined_call_operand.vmem [shape: f32[8,32], index: 1, kind: input, shape index: {}]   ;;  %s1233_s2 = inlined_call_operand.vmem [shape: f32[64,64], index: 2, kind: input, shape index: {}]   ;;  %s1234_s3 = inlined_call_operand.vmem [shape: f32[1,64], index: 3, kind: input, shape index: {}]   ;;  %s1235_s4 = inlined_call_operand.vmem [shape: f32[64,32], index: 4, kind: input, shape index: {}]   ;;  %s1236_s5 = inlined_call_operand.vmem [shape: f32[3,32], index: 5, kind: input, shape index: {}]   ;;  %s1237_s6 = inlined_call_operand.vmem [shape: f32[32,32], index: 6, kind: input, shape index: {}]   ;;  %s1238_s7 = inlined_call_operand.vmem [shape: f32[1,32], index: 7, kind: input, shape index: {}]   ;;  %s1239_s8 = inlined_call_operand.vmem [shape: f32[32,16], index: 8, kind: input, shape index: {}]   ;;  %s1240_s9 = inlined_call_operand.vmem [shape: f32[3,16], index: 9, kind: input, shape index: {}]   ;;  %s1241_s10 = inlined_call_operand.vmem [shape: f32[48,64], index: 10, kind: input, shape index: {}]   ;;  %s1242_s11 = inlined_call_operand.vmem [shape: f32[1,64], index: 11, kind: input, shape index: {}]   ;;  %s1243_s12 = inlined_call_operand.vmem [shape: f32[64,32], index: 12, kind: input, shape index: {}]   ;;  %s1244_s13 = inlined_call_operand.vmem [shape: f32[3,32], index: 13, kind: input, shape index: {}]   ;;  %s1245_s14 = inlined_call_operand.hbm [shape: f32[8,128], index: 14, kind: output, shape index: {}]  }
   0x1   :  { %v49_v0 = vld [vmem:[%s1232_s1] sm:$0xff]  ;;  %v57_v2 = vld [vmem:[%s1233_s2 + $0x8] sm:$0xff]  ;;  %842 = vmatprep.subr.bf16.mxu0 %v936_v3  ;;  %v58_v5 = vld [vmem:[%s1233_s2 + $0x10] sm:$0xff]  ;;  %764 = vmatprep.mubr.msk.f32.mxu0 %vm937_vm0, %v938_v7 }
   0x2   :  { %v56_v1 = vld [vmem:[%s1233_s2] sm:$0xff]  ;;  %51 = vrot.lane.b32.xlu0 %v49_v0, %s935_s19  ;;  %v59_v6 = vld [vmem:[%s1233_s2 + $0x18] sm:$0xff]  ;;  %854 = vmatprep.subr.bf16.mxu1 %v936_v3  ;;  %v66_v11 = vld [vmem:[%s1235_s4 + $0x8] sm:$0xff] }
   0x3   :  { %v843_v4 = vpack.c.bf16 %v57_v2, %v56_v1  ;;  %v846_v8 = vpack.c.bf16 %v59_v6, %v58_v5  ;;  %v60_v9 = vld [vmem:[%s1233_s2 + $0x20] sm:$0xff]  ;;  %783 = vmatprep.mubr.msk.f32.mxu1 %vm937_vm0, %v938_v7  ;;  %v61_v12 = vld [vmem:[%s1233_s2 + $0x28] sm:$0xff]  ;;  %v67_v14 = vld [vmem:[%s1235_s4 + $0x10] sm:$0xff] }
   0x4   :  { %v65_v10 = vld [vmem:[%s1235_s4] sm:$0xff]  ;;  %v68_v15 = vld [vmem:[%s1235_s4 + $0x18] sm:$0xff] }
   0x5   :  { %844 = vmatpush3.bf16.msra.mxu0 %v843_v4  ;;  %v855_v13 = vpack.c.bf16 %v66_v11, %v65_v10 }
   0x6   :  { %845 = vmatprep.subr.bf16.mxu0 %v936_v3 }
   0x7   :  { %19 = vsyncpa [#allocation3], 0  ;;  %856 = vmatpush3.bf16.msra.mxu1 %v855_v13  ;;  %v858_v16 = vpack.c.bf16 %v68_v15, %v67_v14  ;;  %v849_v17 = vpack.c.bf16 %v61_v12, %v60_v9  ;;  %v69_v18 = vld [vmem:[%s1235_s4 + $0x20] sm:$0xff]  ;;  %v70_v19 = vld [vmem:[%s1235_s4 + $0x28] sm:$0xff]  ;;  %vm54_vm1 = vcmask 261120   ;;  %vm80_vm2 = vcmask 523264  }
   0x8   :  { %857 = vmatprep.subr.bf16.mxu1 %v936_v3  ;;  %v62_v20 = vld [vmem:[%s1233_s2 + $0x30] sm:$0xff]  ;;  %v63_v21 = vld [vmem:[%s1233_s2 + $0x38] sm:$0xff]  ;;  %v861_v22 = vpack.c.bf16 %v70_v19, %v69_v18  ;;  %v48_v24 = vld [vmem:[%s1231_s0] sm:$0xff]  ;;  %v155_v44 = vlaneseq  ;;  %vm431_vm3 = vcmask 130048   ;;  %vm490_vm4 = vcmask 392192  }
   0x9   :  { %847 = vmatpush3.bf16.msra.mxu0 %v846_v8  ;;  %v852_v23 = vpack.c.bf16 %v63_v21, %v62_v20  ;;  %v71_v27 = vld [vmem:[%s1235_s4 + $0x30] sm:$0xff]  ;;  %v72_v28 = vld [vmem:[%s1235_s4 + $0x38] sm:$0xff]  ;;  %v695_v30 = vld [vmem:[%s1234_s3] ss:$0 sm:$0xff]  ;;  %vm678_vm5 = vcmask 654336  }
   0xa   :  { %848 = vmatprep.subr.bf16.mxu0 %v936_v3  ;;  %v864_v29 = vpack.c.bf16 %v72_v28, %v71_v27  ;;  %v264_v35 = vld [vmem:[%s1237_s6] sm:$0xff]  ;;  %v265_v36 = vld [vmem:[%s1237_s6 + $0x8] sm:$0xff]  ;;  %v266_v38 = vld [vmem:[%s1237_s6 + $0x10] sm:$0xff]  ;;  %v156_v45 = vshrl.u32 %v155_v44, 7 }
   0xb   :  { %859 = vmatpush3.bf16.msra.mxu1 %v858_v16  ;;  %v867_v37 = vpack.c.bf16 %v265_v36, %v264_v35  ;;  %v267_v39 = vld [vmem:[%s1237_s6 + $0x18] sm:$0xff]  ;;  %v269_v41 = vld [vmem:[%s1239_s8] sm:$0xff]  ;;  %v270_v42 = vld [vmem:[%s1239_s8 + $0x8] sm:$0xff] }
   0xc   :  { %860 = vmatprep.subr.bf16.mxu1 %v936_v3  ;;  %v870_v40 = vpack.c.bf16 %v267_v39, %v266_v38  ;;  %v873_v43 = vpack.c.bf16 %v270_v42, %v269_v41  ;;  %v1116_v46 = vsub.s32 0, %v156_v45  ;;  %v73_v47 = vld [vmem:[%s1236_s5] sm:$0x7]  ;;  %v1124_v9 = vsub.s32 1, %v156_v45  ;;  %v272_v18 = vld [vmem:[%s1239_s8 + $0x18] sm:$0xff]  ;;  %v470_v27 = vld [vmem:[%s1241_s10 + $0x10] sm:$0xff] }
   0xd   :  { %850 = vmatpush3.bf16.msra.mxu0 %v849_v17  ;;  %v1126_v10 = vsub.s32 2, %v156_v45  ;;  %v271_v17 = vld [vmem:[%s1239_s8 + $0x10] sm:$0xff]  ;;  %v698_v20 = vld [vmem:[%s1238_s7] ss:$0 sm:$0xff] }
   0xe   :  { %851 = vmatprep.subr.bf16.mxu0 %v936_v3  ;;  %v158_v48 = vrot.slane %v73_v47, %v1116_v46  ;;  %v257_v11 = vrot.slane %v73_v47, %v1124_v9  ;;  %v876_v19 = vpack.c.bf16 %v272_v18, %v271_v17  ;;  %v482_v17 = vld [vmem:[%s1243_s12 + $0x38] sm:$0xff] }
   0xf   :  { %862 = vmatpush3.bf16.msra.mxu1 %v861_v22  ;;  %v262_v14 = vrot.slane %v73_v47, %v1126_v10 }
  0x10   :  { %863 = vmatprep.subr.bf16.mxu1 %v936_v3 }
  0x11   :  { %853 = vmatpush3.bf16.msra.mxu0 %v852_v23 }
  0x12   :  { %866 = vmatprep.subr.bf16.mxu0 %v936_v3 }
  0x13   :  { %865 = vmatpush3.bf16.msra.mxu1 %v864_v29  ;;  %v471_v29 = vld [vmem:[%s1241_s10 + $0x18] sm:$0xff] }
  0x14   :  { %872 = vmatprep.subr.bf16.mxu1 %v936_v3 }
  0x74   :  { %v52_v25 = vpop.permute.xlu0 %51 }
  0x75   :  { %v55_v26 = vsel %vm54_vm1, %v48_v24, %v52_v25  ;;  %v468_v25 = vld [vmem:[%s1241_s10] sm:$0xff] }
  0x76   :  { %765 = vmatmul.mubr.msk.f32.vlgmr.msra.gmra.mrb[0].mxu0 %vm80_vm2, %v55_v26  ;;  %v469_v26 = vld [vmem:[%s1241_s10 + $0x8] sm:$0xff] }
  0x77   :  { %794 = vmatprep.mubr.msk.f32.mxu0 %vm937_vm0, %v938_v7  ;;  %868 = vmatpush3.bf16.msra.mxu0 %v867_v37  ;;  %v879_v28 = vpack.c.bf16 %v469_v26, %v468_v25 }
  0x78   :  { %869 = vmatprep.subr.bf16.mxu0 %v936_v3 }
  0x7b   :  { %871 = vmatpush3.bf16.msra.mxu0 %v870_v40 }
  0x7c   :  { %878 = vmatprep.subr.bf16.mxu0 %v936_v3 }
 0x149   :  { %v150_v31 = vpop.f32.mrb[0].mxu0 }
 0x14a   :  { %v151_v32 = vadd.f32 %v695_v30, %v150_v31  ;;  %v766_v33 = vpop.f32.mrb[1].mxu0  ;;  %v882_v30 = vpack.c.bf16 %v471_v29, %v470_v27  ;;  %v473_v31 = vld [vmem:[%s1241_s10 + $0x28] sm:$0xff] }
 0x14b   :  { %v273_v33 = vld [vmem:[%s1240_s9] sm:$0x7] }
 0x14c   :  { %v154_v34 = vmax.f32 %v151_v32, 0.0 }
 0x14e   :  { %784 = vmatmul.mubr.msk.f32.vlgmr.msra.gmra.mrb[0].mxu1 %vm80_vm2, %v154_v34  ;;  %v357_v34 = vrot.slane %v273_v33, %v1116_v46 }
 0x14f   :  { %805 = vmatprep.mubr.msk.f32.mxu1 %vm937_vm0, %v938_v7  ;;  %874 = vmatpush3.bf16.msra.mxu1 %v873_v43 }
 0x150   :  { %875 = vmatprep.subr.bf16.mxu1 %v936_v3 }
 0x153   :  { %877 = vmatpush3.bf16.msra.mxu1 %v876_v19 }
 0x154   :  { %887 = vmatprep.subr.bf16.mxu1 %v936_v3 }
 0x221   :  { %v228_v49 = vpop.f32.mrb[0].mxu1 }
 0x222   :  { %v229_v50 = vadd.f32 %v228_v49, %v158_v48  ;;  %v785_v51 = vpop.f32.mrb[1].mxu1 }
 0x224   :  { %v232_v52 = vsel %vm54_vm1, %v229_v50, 0.0 }
 0x225   :  { %v233_v53 = vrot.slane %v232_v52, 4 }
 0x227   :  { %v234_v54 = vadd.f32 %v233_v53, %v232_v52 }
 0x229   :  { %v235_v55 = vrot.slane %v234_v54, 2 }
 0x22b   :  { %v236_v56 = vadd.f32 %v235_v55, %v234_v54 }
 0x22d   :  { %v237_v57 = vrot.slane %v236_v56, 1 }
 0x22f   :  { %v238_v58 = vadd.f32 %v237_v57, %v236_v56 }
 0x231   :  { %v240_v59 = vmul.f32 0.125, %v238_v58  ;;  %v475_v58 = vld [vmem:[%s1243_s12] sm:$0xff] }
 0x233   :  { %v241_v60 = vsub.f32 %v229_v50, %v240_v59  ;;  %v476_v59 = vld [vmem:[%s1243_s12 + $0x8] sm:$0xff] }
 0x235   :  { %v242_v61 = vmul.f32 %v241_v60, %v241_v60 }
 0x237   :  { %v243_v62 = vsel %vm54_vm1, %v242_v61, 0.0  ;;  %v888_v61 = vpack.c.bf16 %v476_v59, %v475_v58 }
 0x238   :  { %v244_v63 = vrot.slane %v243_v62, 4 }
 0x23a   :  { %v245_v0 = vadd.f32 %v244_v63, %v243_v62  ;;  %v478_v62 = vld [vmem:[%s1243_s12 + $0x18] sm:$0xff] }
 0x23c   :  { %v246_v1 = vrot.slane %v245_v0, 2 }
 0x23e   :  { %v247_v2 = vadd.f32 %v246_v1, %v245_v0  ;;  %v456_v0 = vrot.slane %v273_v33, %v1124_v9  ;;  %v479_v1 = vld [vmem:[%s1243_s12 + $0x20] sm:$0xff] }
 0x240   :  { %v248_v4 = vrot.slane %v247_v2, 1 }
 0x242   :  { %v249_v5 = vadd.f32 %v248_v4, %v247_v2  ;;  %v480_v2 = vld [vmem:[%s1243_s12 + $0x28] sm:$0xff] }
 0x244   :  { %v250_v6 = vmul.f32 0.125, %v249_v5 }
 0x246   :  { %v251_v8 = vadd.f32 1e-05, %v250_v6  ;;  %v461_v6 = vrot.slane %v273_v33, %v1126_v10 }
 0x248   :  { %905 = vrsqrt.f32 %v251_v8  ;;  %v894_v8 = vpack.c.bf16 %v480_v2, %v479_v1 }
 0x252   :  { %v906_v12 = vpop.eup %905 }
 0x253   :  { %v253_v13 = vmul.f32 %v906_v12, %v241_v60  ;;  %v477_v60 = vld [vmem:[%s1243_s12 + $0x10] sm:$0xff] }
 0x254   :  { %v891_v63 = vpack.c.bf16 %v478_v62, %v477_v60 }
 0x255   :  { %v258_v15 = vmul.f32 %v257_v11, %v253_v13 }
 0x257   :  { %v1130_v16 = vadd.f32 %v262_v14, %v258_v15  ;;  %v481_v15 = vld [vmem:[%s1243_s12 + $0x30] sm:$0xff]  ;;  %s940_s12 = smov [#allocation2]  }
 0x258   :  { %v897_v18 = vpack.c.bf16 %v482_v17, %v481_v15 }
 0x259   :  { %795 = vmatmul.mubr.msk.f32.vlgmr.msra.gmra.mrb[2].mxu0 %vm54_vm1, %v1130_v16 }
 0x25a   :  { %820 = vmatprep.mubr.msk.f32.mxu0 %vm937_vm0, %v938_v7  ;;  %880 = vmatpush3.bf16.msra.mxu0 %v879_v28 }
 0x25b   :  { %881 = vmatprep.subr.bf16.mxu0 %v936_v3 }
 0x25e   :  { %883 = vmatpush3.bf16.msra.mxu0 %v882_v30 }
 0x25f   :  { %884 = vmatprep.subr.bf16.mxu0 %v936_v3 }
 0x32c   :  { %v349_v21 = vpop.f32.mrb[2].mxu0 }
 0x32d   :  { %v350_v22 = vadd.f32 %v698_v20, %v349_v21  ;;  %v796_v23 = vpop.f32.mrb[3].mxu0 }
 0x32f   :  { %v353_v24 = vmax.f32 %v350_v22, 0.0  ;;  %v483_v22 = vld [vmem:[%s1244_s13] sm:$0x7]  ;;  %s687_s13 = sshll.u32 %s940_s12, 4  ;;  %s688_s13 = int_to_ptr.vmem [resolvable:$true] %s687_s13 }
 0x330   :  { %v568_v23 = vrot.slane %v483_v22, %v1116_v46  ;;  %s911_s20 = scalar_lea.vmem %s688_s13, 128  ;;  %p916_p1 = scmp.lt.s32.totalorder %s688_s13, %s688_s13 }
 0x331   :  { %806 = vmatmul.mubr.msk.f32.vlgmr.msra.gmra.mrb[2].mxu1 %vm54_vm1, %v353_v24  ;;  %p912_p0 = scmp.ne.s32.totalorder %s688_s13, %s911_s20  ;;  %p917_p2 = scmp.lt.s32.totalorder %s911_s20, %s911_s20 }
 0x332   :  { %839 = vmatprep.mubr.msk.f32.mxu1 %vm937_vm0, %v938_v7  ;;  %v472_v7 = vld [vmem:[%s1241_s10 + $0x20] sm:$0xff]  ;;  %889 = vmatpush3.bf16.msra.mxu1 %v888_v61 }
 0x333   :  { %v885_v32 = vpack.c.bf16 %v473_v31, %v472_v7  ;;  %890 = vmatprep.subr.bf16.mxu1 %v936_v3  ;;  %p918_p3 = por %p917_p2, %p916_p1 }
 0x335   :  { %886 = vmatpush3.bf16.msra.mxu0 %v885_v32  ;;  %p919_p4 = pnand %p918_p3, %p912_p0 }
 0x336   :  { %892 = vmatpush3.bf16.msra.mxu1 %v891_v63 }
 0x337   :  { %893 = vmatprep.subr.bf16.mxu1 %v936_v3 }
 0x33a   :  { %895 = vmatpush3.bf16.msra.mxu1 %v894_v8 }
 0x33b   :  { %896 = vmatprep.subr.bf16.mxu1 %v936_v3  ;;  %v701_v3 = vld [vmem:[%s1242_s11] ss:$0 sm:$0xff]  ;;  %s939_s11 = smov 48  }
 0x33e   :  { %898 = vmatpush3.bf16.msra.mxu1 %v897_v18 }
 0x404   :  { %v427_v35 = vpop.f32.mrb[2].mxu1 }
 0x405   :  { %v428_v36 = vadd.f32 %v427_v35, %v357_v34  ;;  %v807_v37 = vpop.f32.mrb[3].mxu1 }
 0x407   :  { %v432_v38 = vsel %vm431_vm3, %v428_v36, 0.0 }
 0x408   :  { %v433_v39 = vrot.slane %v432_v38, 4 }
 0x40a   :  { %v434_v40 = vadd.f32 %v433_v39, %v432_v38 }
 0x40c   :  { %v435_v41 = vrot.slane %v434_v40, 2 }
 0x40e   :  { %v436_v42 = vadd.f32 %v435_v41, %v434_v40 }
 0x410   :  { %v437_v43 = vrot.slane %v436_v42, 1 }
 0x412   :  { %v438_v44 = vadd.f32 %v437_v43, %v436_v42 }
 0x414   :  { %v439_v45 = vmul.f32 0.125, %v438_v44  ;;  %v666_v44 = vrot.slane %v483_v22, %v1124_v9 }
 0x416   :  { %v440_v47 = vsub.f32 %v428_v36, %v439_v45 }
 0x418   :  { %v441_v48 = vmul.f32 %v440_v47, %v440_v47 }
 0x41a   :  { %v442_v49 = vsel %vm431_vm3, %v441_v48, 0.0  ;;  %v671_v48 = vrot.slane %v483_v22, %v1126_v10 }
 0x41b   :  { %v443_v50 = vrot.slane %v442_v49, 4 }
 0x41d   :  { %v444_v51 = vadd.f32 %v443_v50, %v442_v49 }
 0x41f   :  { %v445_v52 = vrot.slane %v444_v51, 2 }
 0x421   :  { %v446_v53 = vadd.f32 %v445_v52, %v444_v51 }
 0x423   :  { %v447_v54 = vrot.slane %v446_v53, 1 }
 0x425   :  { %v448_v55 = vadd.f32 %v447_v54, %v446_v53 }
 0x427   :  { %v449_v56 = vmul.f32 0.125, %v448_v55 }
 0x429   :  { %v450_v57 = vadd.f32 1e-05, %v449_v56 }
 0x42b   :  { %907 = vrsqrt.f32 %v450_v57 }
 0x435   :  { %v908_v4 = vpop.eup %907 }
 0x436   :  { %v452_v5 = vmul.f32 %v908_v4, %v440_v47 }
 0x438   :  { %v457_v11 = vmul.f32 %v456_v0, %v452_v5 }
 0x43a   :  { %v462_v12 = vadd.f32 %v461_v6, %v457_v11 }
 0x43c   :  { %464 = vrot.lane.b32.xlu0 %v462_v12, %s935_s19 }
 0x4ae   :  { %v465_v13 = vpop.permute.xlu0 %464 }
 0x4af   :  { %v467_v14 = vsel %vm54_vm1, %v1130_v16, %v465_v13 }
 0x4b0   :  { %821 = vmatmul.mubr.msk.f32.vlgmr.msra.gmra.mrb[4].mxu0 %vm490_vm4, %v467_v14 }
 0x583   :  { %v560_v19 = vpop.f32.mrb[4].mxu0 }
 0x584   :  { %v561_v20 = vadd.f32 %v701_v3, %v560_v19  ;;  %v822_v21 = vpop.f32.mrb[5].mxu0 }
 0x586   :  { %v564_v16 = vmax.f32 %v561_v20, 0.0 }
 0x588   :  { %840 = vmatmul.mubr.msk.f32.vlgmr.msra.gmra.mrb[4].mxu1 %vm80_vm2, %v564_v16 }
 0x65b   :  { %v638_v24 = vpop.f32.mrb[4].mxu1 }
 0x65c   :  { %v639_v25 = vadd.f32 %v638_v24, %v568_v23  ;;  %v841_v26 = vpop.f32.mrb[5].mxu1 }
 0x65e   :  { %v642_v27 = vsel %vm54_vm1, %v639_v25, 0.0 }
 0x65f   :  { %v643_v28 = vrot.slane %v642_v27, 4 }
 0x661   :  { %v644_v29 = vadd.f32 %v643_v28, %v642_v27 }
 0x663   :  { %v645_v30 = vrot.slane %v644_v29, 2 }
 0x665   :  { %v646_v7 = vadd.f32 %v645_v30, %v644_v29 }
 0x667   :  { %v647_v31 = vrot.slane %v646_v7, 1 }
 0x669   :  { %v648_v32 = vadd.f32 %v647_v31, %v646_v7 }
 0x66b   :  { %v649_v33 = vmul.f32 0.125, %v648_v32 }
 0x66d   :  { %v650_v34 = vsub.f32 %v639_v25, %v649_v33 }
 0x66f   :  { %v651_v35 = vmul.f32 %v650_v34, %v650_v34 }
 0x671   :  { %v652_v36 = vsel %vm54_vm1, %v651_v35, 0.0 }
 0x672   :  { %v653_v37 = vrot.slane %v652_v36, 4 }
 0x674   :  { %v654_v38 = vadd.f32 %v653_v37, %v652_v36 }
 0x676   :  { %v655_v39 = vrot.slane %v654_v38, 2 }
 0x678   :  { %v656_v46 = vadd.f32 %v655_v39, %v654_v38 }
 0x67a   :  { %v657_v40 = vrot.slane %v656_v46, 1 }
 0x67c   :  { %v658_v41 = vadd.f32 %v657_v40, %v656_v46 }
 0x67e   :  { %v659_v42 = vmul.f32 0.125, %v658_v41 }
 0x680   :  { %v660_v43 = vadd.f32 1e-05, %v659_v42 }
 0x682   :  { %909 = vrsqrt.f32 %v660_v43 }
 0x68c   :  { %v910_v45 = vpop.eup %909 }
 0x68d   :  { %v662_v47 = vmul.f32 %v910_v45, %v650_v34 }
 0x68f   :  { %v667_v49 = vmul.f32 %v666_v44, %v662_v47 }
 0x691   :  { %v672_v50 = vadd.f32 %v671_v48, %v667_v49 }
 0x693   :  { %674 = vrot.lane.b32.xlu1 %v672_v50, %s939_s11 }
 0x705   :  { %v675_v51 = vpop.permute.xlu1 %674 }
 0x706   :  { %v677_v52 = vsel %vm490_vm4, %v467_v14, %v675_v51 }
 0x707   :  { %v679_v53 = vsel %vm678_vm5, %v677_v52, 0.0 }
 0x708   :  { %680 = vst [vmem:[#allocation2] sm:$0xff] %v679_v53 }
 0x709   :  { %922 = shalt.err (!%p919_p4)
}
 0x70a   :  { %s923_s1 = scalar_lea.hbm %s1245_s14, 128 }
 0x70b   :  { %p924_p5 = scmp.ne.s32.totalorder %s1245_s14, %s923_s1  ;;  %p927_p6 = scmp.lt.u32.totalorder %s923_s1, %s1245_s14 }
 0x70d   :  { %p929_p7 = pnand %p927_p6, %p924_p5 }
 0x70f   :  { %932 = shalt.err (!%p929_p7)
}
 0x710   :  { %690 = dma.vmem_to_hbm [thread:$0]  %s688_s13, 128, %s1245_s14, [#allocation3]  }
 0x711   :  { %933 = dma.done.wait [#allocation3], 128  }
 0x712   :  { %934 = vsyncadd [#allocation3], 4294967168 }
 0x713   :  { %694 = vsyncpa [#allocation3], 1 }

</bundles_post_ra>
